<compile_context>
chip_gen: v7x
topology: tpu7x:2x2x1
jax: 0.10.0
libtpu: 0.0.40
codegen_flags: <defaults>
</compile_context>

<pallas_src>
import functools

import jax
import jax.numpy as jnp
from jax.experimental import pallas as pl
from jax.experimental.pallas import tpu as pltpu


def _pick_tile_h(H, W, C, itemsize, target, gran, budget_bytes):
    """Largest multiple of `gran` dividing H that fits the VMEM budget and is
    <= target.  Fallback: single whole-image tile (when H % gran != 0)."""
    if H % gran != 0:
        return H
    # VMEM bytes per tile-row:
    #   2 inputs x 2 pipeline buffers x (C, W) rows in the native dtype
    # + ~16 f32 rows of in-kernel working set (gray / rolled / edge temps, x2 images).
    per_row = 4 * C * W * itemsize + 16 * W * 4
    th_budget = max(gran, (budget_bytes // per_row) // gran * gran)
    th = min(target, th_budget, H)
    th = max(gran, th // gran * gran)
    while H % th != 0:
        th -= gran
    return th


def _fold_rows_to_8(x):
    """Sum an (R, W) f32 array into an (8, W) partial using 8-aligned VPU adds."""
    r, w = x.shape
    n_full = r // 8
    acc = jnp.zeros((8, w), x.dtype)
    for i in range(n_full):
        acc = acc + x[8 * i:8 * i + 8, :]
    rem = r - 8 * n_full
    if rem:  # only reachable on the single-tile fallback path (H not multiple of 8)
        tail = jnp.sum(x[8 * n_full:r, :], axis=0, keepdims=True)
        first_row = jax.lax.broadcasted_iota(jnp.int32, (8, w), 0) == 0
        acc = acc + jnp.where(first_row, tail, 0.0)
    return acc


def _fold_lanes(x, w_out):
    """Sum an (8, W) partial into (8, w_out) with 128-aligned VPU adds."""
    _, w = x.shape
    if w == w_out:
        return x
    acc = jnp.zeros((8, w_out), x.dtype)
    for i in range(w // w_out):
        acc = acc + x[:, i * w_out:(i + 1) * w_out]
    return acc


def _edge_map(g, top_row, bot_row, row_first, row_last, has_left, has_right):
    """Sobel edge magnitude of one grayscale tile.

    g: (TH, W) f32 tile; top_row / bot_row: (1, W) grayscale rows just
    above/below the tile (already zeroed when the tile touches the image edge).
    """
    th, w = g.shape
    # Vertical neighbours: sublane rolls + halo-row insert.
    g_up = jnp.where(row_first, top_row, pltpu.roll(g, 1, axis=0))       # G[r-1]
    g_dn = jnp.where(row_last, bot_row, pltpu.roll(g, th - 1, axis=0))   # G[r+1]
    vsum = g_up + 2.0 * g + g_dn        # vertical [1, 2, 1]
    vdif = g_dn - g_up                  # vertical [-1, 0, 1]

    def lane_neighbours(x):
        right = jnp.where(has_right, pltpu.roll(x, w - 1, axis=1), 0.0)  # X[:, c+1]
        left = jnp.where(has_left, pltpu.roll(x, 1, axis=1), 0.0)        # X[:, c-1]
        return left, right

    sl, sr = lane_neighbours(vsum)
    ex = sr - sl                        # horizontal [-1, 0, 1] of vsum  -> sobel_x
    dl, dr = lane_neighbours(vdif)
    ey = dl + 2.0 * vdif + dr           # horizontal [1, 2, 1] of vdif   -> sobel_y
    return jnp.sqrt(ex * ex + ey * ey)


def _edge_loss_kernel(*refs, has_halo, halo_blk, w_out):
    if has_halo:
        (hr_ref, hr_top_ref, hr_bot_ref,
         gt_ref, gt_top_ref, gt_bot_ref, out_ref) = refs
    else:
        hr_ref, gt_ref, out_ref = refs
        hr_top_ref = hr_bot_ref = gt_top_ref = gt_bot_ref = None

    h = pl.program_id(1)
    n_h = pl.num_programs(1)
    _, _, th, w = hr_ref.shape

    # Boundary masks: built once per grid step, reused for HR and GT.
    row_idx = jax.lax.broadcasted_iota(jnp.int32, (th, w), 0)
    col_idx = jax.lax.broadcasted_iota(jnp.int32, (th, w), 1)
    row_first = row_idx == 0
    row_last = row_idx == th - 1
    has_left = col_idx > 0
    has_right = col_idx < w - 1

    if has_halo:
        # Gate the halo rows to zero at the true image top / bottom (zero padding).
        top_gate = (h > 0).astype(jnp.float32)
        bot_gate = (h < n_h - 1).astype(jnp.float32)

    def gray_and_halos(main_ref, top_ref, bot_ref):
        # Channel SUM (not mean) in f32: edges scale linearly with the grayscale,
        # so the 1/C factor is folded into the final loss normalisation.
        g = jnp.sum(main_ref[0].astype(jnp.float32), axis=0)                  # (TH, W)
        if not has_halo:
            zero = jnp.zeros((1, w), jnp.float32)
            return g, zero, zero
        top = jnp.sum(
            top_ref[0, :, halo_blk - 1:halo_blk, :].astype(jnp.float32), axis=0)  # (1, W)
        bot = jnp.sum(bot_ref[0, :, 0:1, :].astype(jnp.float32), axis=0)           # (1, W)
        return g, top * top_gate, bot * bot_gate

    g_hr, t_hr, b_hr = gray_and_halos(hr_ref, hr_top_ref, hr_bot_ref)
    g_gt, t_gt, b_gt = gray_and_halos(gt_ref, gt_top_ref, gt_bot_ref)

    e_hr = _edge_map(g_hr, t_hr, b_hr, row_first, row_last, has_left, has_right)
    e_gt = _edge_map(g_gt, t_gt, b_gt, row_first, row_last, has_left, has_right)

    d = e_hr - e_gt
    # Per-block (8, w_out) partial sums of diff^2 (sublane + lane folds only, no
    # cross-lane XLU reduce in the hot loop); final reduction happens in JAX.
    out_ref[0, 0] = _fold_lanes(_fold_rows_to_8(d * d), w_out)


def edge_loss(hr_images, gt_images, *, tile_h=256, vmem_budget_bytes=12 * 1024 * 1024):
    """Mean-squared error between Sobel edge maps of two NCHW image batches."""
    B, C, H, W = hr_images.shape
    assert gt_images.shape == hr_images.shape, (gt_images.shape, hr_images.shape)
    if gt_images.dtype != hr_images.dtype:
        gt_images = gt_images.astype(hr_images.dtype)

    itemsize = jnp.dtype(hr_images.dtype).itemsize
    gran = 8 if itemsize >= 4 else 16          # sublane granularity (f32 vs bf16)
    th = _pick_tile_h(H, W, C, itemsize, tile_h, gran, vmem_budget_bytes)
    n_h = H // th if H % th == 0 else 1
    has_halo = n_h > 1
    # Lane-fold the output partials to 128 lanes when possible: unmasked,
    # lane-dense stores and output bytes independent of the image width.
    w_out = 128 if (W > 128 and W % 128 == 0) else W

    main_spec = pl.BlockSpec((1, C, th, W), lambda b, h: (b, 0, h, 0))
    out_spec = pl.BlockSpec((1, 1, 8, w_out), lambda b, h: (b, h, 0, 0))

    if has_halo:
        halo_blk = gran                        # thin block carrying the 1-row halo
        n_hb = H // halo_blk                   # number of halo blocks along H
        tpb = th // halo_blk                   # halo blocks per tile
        top_spec = pl.BlockSpec(
            (1, C, halo_blk, W),
            lambda b, h: (b, 0, jnp.maximum(h * tpb - 1, 0), 0))
        bot_spec = pl.BlockSpec(
            (1, C, halo_blk, W),
            lambda b, h: (b, 0, jnp.minimum((h + 1) * tpb, n_hb - 1), 0))
        in_specs = [main_spec, top_spec, bot_spec,
                    main_spec, top_spec, bot_spec]
        operands = (hr_images, hr_images, hr_images,
                    gt_images, gt_images, gt_images)
    else:
        halo_blk = gran                        # unused on this path
        in_specs = [main_spec, main_spec]      # no halo DMA streams needed
        operands = (hr_images, gt_images)

    kernel = functools.partial(_edge_loss_kernel, has_halo=has_halo,
                               halo_blk=halo_blk, w_out=w_out)

    partial_sums = pl.pallas_call(
        kernel,
        out_shape=jax.ShapeDtypeStruct((B, n_h, 8, w_out), jnp.float32),
        grid_spec=pltpu.PrefetchScalarGridSpec(
            num_scalar_prefetch=0,
            grid=(B, n_h),
            in_specs=in_specs,
            out_specs=out_spec,
        ),
        compiler_params=pltpu.CompilerParams(
            dimension_semantics=("parallel", "parallel"),
            vmem_limit_bytes=32 * 1024 * 1024),
    )(*operands)

    # Final cross-lane reduction + normalisation: divide by C^2 (grayscale was
    # the channel SUM inside the kernel) and by B*H*W for the mean over the
    # (B, 1, H, W) edge maps.
    return jnp.sum(partial_sums) / jnp.float32(B * H * W * C * C)


# ----------------------------- pure-JAX reference -----------------------------

_SOBEL_X = ((-1.0, 0.0, 1.0), (-2.0, 0.0, 2.0), (-1.0, 0.0, 1.0))
_SOBEL_Y = ((-1.0, -2.0, -1.0), (0.0, 0.0, 0.0), (1.0, 2.0, 1.0))


def _edge_loss_ref(hr, gt):
    """Pure-JAX reference matching the PyTorch module."""
    def edges(x):
        gray = jnp.mean(x, axis=1, keepdims=True)                 # (B, 1, H, W)
        padded = jnp.pad(gray, ((0, 0), (0, 0), (1, 1), (1, 1)))
        H, W = gray.shape[2], gray.shape[3]
        ex = jnp.zeros_like(gray)
        ey = jnp.zeros_like(gray)
        for u in range(3):
            for v in range(3):
                win = padded[:, :, u:u + H, v:v + W]
                ex = ex + _SOBEL_X[u][v] * win
                ey = ey + _SOBEL_Y[u][v] * win
        return jnp.sqrt(ex ** 2 + ey ** 2)
    d = edges(hr) - edges(gt)
    return jnp.mean(d * d)


if __name__ == "__main__":
    key = jax.random.PRNGKey(0)
    k1, k2, k3, k4, k5, k6 = jax.random.split(key, 6)

    # 1) Shapes implied by the module (B, C, H, W): single H tile, no halo DMAs.
    B, C, H, W = 2, 4, 16, 16
    hr = jax.random.uniform(k1, (B, C, H, W), dtype=jnp.float32)
    gt = jax.random.uniform(k2, (B, C, H, W), dtype=jnp.float32)
    loss = edge_loss(hr, gt)
    jax.block_until_ready(loss)
    ref = _edge_loss_ref(hr, gt)
    assert jnp.allclose(loss, ref, rtol=1e-5, atol=1e-5), (float(loss), float(ref))

    # 2) Exercise the spatial-tiling + halo path (grid = (B, 2)).
    B2, C2, H2, W2 = 2, 3, 32, 16
    hr2 = jax.random.uniform(k3, (B2, C2, H2, W2), dtype=jnp.float32)
    gt2 = jax.random.uniform(k4, (B2, C2, H2, W2), dtype=jnp.float32)
    loss2 = edge_loss(hr2, gt2, tile_h=16)
    jax.block_until_ready(loss2)
    ref2 = _edge_loss_ref(hr2, gt2)
    assert jnp.allclose(loss2, ref2, rtol=1e-5, atol=1e-5), (float(loss2), float(ref2))

    # 3) bf16 inputs (half the HBM traffic on v5e/v6e), f32 math inside the kernel.
    loss3 = edge_loss(hr2.astype(jnp.bfloat16), gt2.astype(jnp.bfloat16), tile_h=16)
    jax.block_until_ready(loss3)
    ref3 = _edge_loss_ref(hr2.astype(jnp.bfloat16).astype(jnp.float32),
                          gt2.astype(jnp.bfloat16).astype(jnp.float32))
    assert jnp.allclose(loss3, ref3, rtol=1e-5, atol=1e-5), (float(loss3), float(ref3))

    # 4) W a multiple of 128 (> 128): exercises the lane-dense output fold.
    B4, C4, H4, W4 = 1, 3, 16, 256
    hr4 = jax.random.uniform(k5, (B4, C4, H4, W4), dtype=jnp.float32)
    gt4 = jax.random.uniform(k6, (B4, C4, H4, W4), dtype=jnp.float32)
    loss4 = edge_loss(hr4, gt4)
    jax.block_until_ready(loss4)
    ref4 = _edge_loss_ref(hr4, gt4)
    assert jnp.allclose(loss4, ref4, rtol=1e-5, atol=1e-5), (float(loss4), float(ref4))

    print("KERNEL_OK")
</pallas_src>

<mosaic_0001>
module attributes {stable_mosaic.version = 11 : i64} {
  func.func @_edge_loss_kernel(%arg0: i32, %arg1: i32, %arg2: memref<1x4x16x16xf32, #tpu.memory_space<vmem>>, %arg3: memref<1x4x16x16xf32, #tpu.memory_space<vmem>>, %arg4: memref<1x1x8x16xf32, #tpu.memory_space<vmem>>) attributes {dimension_semantics = [#tpu.dimension_semantics<parallel>, #tpu.dimension_semantics<parallel>], iteration_bounds = array<i64: 2, 1>, scalar_prefetch = 0 : i64, scratch_operands = 0 : i64, tpu.core_type = #tpu.core_type<tc>, window_params = [{transform_indices = @transform_0, window_bounds = array<i64: 1, 4, 16, 16>}, {transform_indices = @transform_1, window_bounds = array<i64: 1, 4, 16, 16>}, {transform_indices = @transform_2, window_bounds = array<i64: 1, 1, 8, 16>}]} {
    %0 = tpu.iota {dimensions = array<i32: 0>} : vector<16x16xi32>
    %1 = tpu.iota {dimensions = array<i32: 1>} : vector<16x16xi32>
    %c0_i32 = arith.constant 0 : i32
    %2 = vector.broadcast %c0_i32 : i32 to vector<16x16xi32>
    %3 = arith.cmpi eq, %0, %2 : vector<16x16xi32>
    %c15_i32 = arith.constant 15 : i32
    %4 = vector.broadcast %c15_i32 : i32 to vector<16x16xi32>
    %5 = arith.cmpi eq, %0, %4 : vector<16x16xi32>
    %c0_i32_0 = arith.constant 0 : i32
    %6 = vector.broadcast %c0_i32_0 : i32 to vector<16x16xi32>
    %7 = arith.cmpi sgt, %1, %6 : vector<16x16xi32>
    %c15_i32_1 = arith.constant 15 : i32
    %8 = vector.broadcast %c15_i32_1 : i32 to vector<16x16xi32>
    %9 = arith.cmpi slt, %1, %8 : vector<16x16xi32>
    %c0 = arith.constant 0 : index
    %c0_2 = arith.constant 0 : index
    %c0_3 = arith.constant 0 : index
    %c0_4 = arith.constant 0 : index
    %10 = vector.load %arg2[%c0, %c0_2, %c0_3, %c0_4] : memref<1x4x16x16xf32, #tpu.memory_space<vmem>>, vector<1x4x16x16xf32>
    %11 = vector.shape_cast %10 : vector<1x4x16x16xf32> to vector<4x16x16xf32>
    %cst = arith.constant dense<0.000000e+00> : vector<16x16xf32>
    %12 = vector.multi_reduction <add>, %11, %cst [0] : vector<4x16x16xf32> to vector<16x16xf32>
    %cst_5 = arith.constant 0.000000e+00 : f32
    %13 = vector.broadcast %cst_5 : f32 to vector<1x16xf32>
    %c0_6 = arith.constant 0 : index
    %c0_7 = arith.constant 0 : index
    %c0_8 = arith.constant 0 : index
    %c0_9 = arith.constant 0 : index
    %14 = vector.load %arg3[%c0_6, %c0_7, %c0_8, %c0_9] : memref<1x4x16x16xf32, #tpu.memory_space<vmem>>, vector<1x4x16x16xf32>
    %15 = vector.shape_cast %14 : vector<1x4x16x16xf32> to vector<4x16x16xf32>
    %cst_10 = arith.constant dense<0.000000e+00> : vector<16x16xf32>
    %16 = vector.multi_reduction <add>, %15, %cst_10 [0] : vector<4x16x16xf32> to vector<16x16xf32>
    %cst_11 = arith.constant 0.000000e+00 : f32
    %17 = vector.broadcast %cst_11 : f32 to vector<1x16xf32>
    %c1_i32 = arith.constant 1 : i32
    %18 = tpu.dynamic_rotate %12 by %c1_i32 dim 0 : vector<16x16xf32>, i32 -> vector<16x16xf32>
    %19 = vector.shape_cast %13 : vector<1x16xf32> to vector<1x16xf32>
    %20 = vector.broadcast %19 : vector<1x16xf32> to vector<16x16xf32>
    %21 = arith.select %3, %20, %18 : vector<16x16xi1>, vector<16x16xf32>
    %c15_i32_12 = arith.constant 15 : i32
    %22 = tpu.dynamic_rotate %12 by %c15_i32_12 dim 0 : vector<16x16xf32>, i32 -> vector<16x16xf32>
    %23 = vector.shape_cast %13 : vector<1x16xf32> to vector<1x16xf32>
    %24 = vector.broadcast %23 : vector<1x16xf32> to vector<16x16xf32>
    %25 = arith.select %5, %24, %22 : vector<16x16xi1>, vector<16x16xf32>
    %cst_13 = arith.constant 2.000000e+00 : f32
    %26 = vector.broadcast %cst_13 : f32 to vector<16x16xf32>
    %27 = arith.mulf %26, %12 : vector<16x16xf32>
    %28 = arith.addf %21, %27 : vector<16x16xf32>
    %29 = arith.addf %28, %25 : vector<16x16xf32>
    %30 = arith.subf %25, %21 : vector<16x16xf32>
    %c15_i32_14 = arith.constant 15 : i32
    %31 = tpu.dynamic_rotate %29 by %c15_i32_14 dim 1 : vector<16x16xf32>, i32 -> vector<16x16xf32>
    %cst_15 = arith.constant 0.000000e+00 : f32
    %32 = vector.broadcast %cst_15 : f32 to vector<16x16xf32>
    %33 = arith.select %9, %31, %32 : vector<16x16xi1>, vector<16x16xf32>
    %c1_i32_16 = arith.constant 1 : i32
    %34 = tpu.dynamic_rotate %29 by %c1_i32_16 dim 1 : vector<16x16xf32>, i32 -> vector<16x16xf32>
    %cst_17 = arith.constant 0.000000e+00 : f32
    %35 = vector.broadcast %cst_17 : f32 to vector<16x16xf32>
    %36 = arith.select %7, %34, %35 : vector<16x16xi1>, vector<16x16xf32>
    %37 = arith.subf %33, %36 : vector<16x16xf32>
    %c15_i32_18 = arith.constant 15 : i32
    %38 = tpu.dynamic_rotate %30 by %c15_i32_18 dim 1 : vector<16x16xf32>, i32 -> vector<16x16xf32>
    %cst_19 = arith.constant 0.000000e+00 : f32
    %39 = vector.broadcast %cst_19 : f32 to vector<16x16xf32>
    %40 = arith.select %9, %38, %39 : vector<16x16xi1>, vector<16x16xf32>
    %c1_i32_20 = arith.constant 1 : i32
    %41 = tpu.dynamic_rotate %30 by %c1_i32_20 dim 1 : vector<16x16xf32>, i32 -> vector<16x16xf32>
    %cst_21 = arith.constant 0.000000e+00 : f32
    %42 = vector.broadcast %cst_21 : f32 to vector<16x16xf32>
    %43 = arith.select %7, %41, %42 : vector<16x16xi1>, vector<16x16xf32>
    %cst_22 = arith.constant 2.000000e+00 : f32
    %44 = vector.broadcast %cst_22 : f32 to vector<16x16xf32>
    %45 = arith.mulf %44, %30 : vector<16x16xf32>
    %46 = arith.addf %43, %45 : vector<16x16xf32>
    %47 = arith.addf %46, %40 : vector<16x16xf32>
    %48 = arith.mulf %37, %37 : vector<16x16xf32>
    %49 = arith.mulf %47, %47 : vector<16x16xf32>
    %50 = arith.addf %48, %49 : vector<16x16xf32>
    %51 = math.sqrt %50 : vector<16x16xf32>
    %c1_i32_23 = arith.constant 1 : i32
    %52 = tpu.dynamic_rotate %16 by %c1_i32_23 dim 0 : vector<16x16xf32>, i32 -> vector<16x16xf32>
    %53 = vector.shape_cast %17 : vector<1x16xf32> to vector<1x16xf32>
    %54 = vector.broadcast %53 : vector<1x16xf32> to vector<16x16xf32>
    %55 = arith.select %3, %54, %52 : vector<16x16xi1>, vector<16x16xf32>
    %c15_i32_24 = arith.constant 15 : i32
    %56 = tpu.dynamic_rotate %16 by %c15_i32_24 dim 0 : vector<16x16xf32>, i32 -> vector<16x16xf32>
    %57 = vector.shape_cast %17 : vector<1x16xf32> to vector<1x16xf32>
    %58 = vector.broadcast %57 : vector<1x16xf32> to vector<16x16xf32>
    %59 = arith.select %5, %58, %56 : vector<16x16xi1>, vector<16x16xf32>
    %cst_25 = arith.constant 2.000000e+00 : f32
    %60 = vector.broadcast %cst_25 : f32 to vector<16x16xf32>
    %61 = arith.mulf %60, %16 : vector<16x16xf32>
    %62 = arith.addf %55, %61 : vector<16x16xf32>
    %63 = arith.addf %62, %59 : vector<16x16xf32>
    %64 = arith.subf %59, %55 : vector<16x16xf32>
    %c15_i32_26 = arith.constant 15 : i32
    %65 = tpu.dynamic_rotate %63 by %c15_i32_26 dim 1 : vector<16x16xf32>, i32 -> vector<16x16xf32>
    %cst_27 = arith.constant 0.000000e+00 : f32
    %66 = vector.broadcast %cst_27 : f32 to vector<16x16xf32>
    %67 = arith.select %9, %65, %66 : vector<16x16xi1>, vector<16x16xf32>
    %c1_i32_28 = arith.constant 1 : i32
    %68 = tpu.dynamic_rotate %63 by %c1_i32_28 dim 1 : vector<16x16xf32>, i32 -> vector<16x16xf32>
    %cst_29 = arith.constant 0.000000e+00 : f32
    %69 = vector.broadcast %cst_29 : f32 to vector<16x16xf32>
    %70 = arith.select %7, %68, %69 : vector<16x16xi1>, vector<16x16xf32>
    %71 = arith.subf %67, %70 : vector<16x16xf32>
    %c15_i32_30 = arith.constant 15 : i32
    %72 = tpu.dynamic_rotate %64 by %c15_i32_30 dim 1 : vector<16x16xf32>, i32 -> vector<16x16xf32>
    %cst_31 = arith.constant 0.000000e+00 : f32
    %73 = vector.broadcast %cst_31 : f32 to vector<16x16xf32>
    %74 = arith.select %9, %72, %73 : vector<16x16xi1>, vector<16x16xf32>
    %c1_i32_32 = arith.constant 1 : i32
    %75 = tpu.dynamic_rotate %64 by %c1_i32_32 dim 1 : vector<16x16xf32>, i32 -> vector<16x16xf32>
    %cst_33 = arith.constant 0.000000e+00 : f32
    %76 = vector.broadcast %cst_33 : f32 to vector<16x16xf32>
    %77 = arith.select %7, %75, %76 : vector<16x16xi1>, vector<16x16xf32>
    %cst_34 = arith.constant 2.000000e+00 : f32
    %78 = vector.broadcast %cst_34 : f32 to vector<16x16xf32>
    %79 = arith.mulf %78, %64 : vector<16x16xf32>
    %80 = arith.addf %77, %79 : vector<16x16xf32>
    %81 = arith.addf %80, %74 : vector<16x16xf32>
    %82 = arith.mulf %71, %71 : vector<16x16xf32>
    %83 = arith.mulf %81, %81 : vector<16x16xf32>
    %84 = arith.addf %82, %83 : vector<16x16xf32>
    %85 = math.sqrt %84 : vector<16x16xf32>
    %86 = arith.subf %51, %85 : vector<16x16xf32>
    %87 = arith.mulf %86, %86 : vector<16x16xf32>
    %cst_35 = arith.constant 0.000000e+00 : f32
    %88 = vector.broadcast %cst_35 : f32 to vector<8x16xf32>
    %89 = vector.extract_strided_slice %87 {offsets = [0, 0], sizes = [8, 16], strides = [1, 1]} : vector<16x16xf32> to vector<8x16xf32>
    %90 = arith.addf %88, %89 : vector<8x16xf32>
    %91 = vector.extract_strided_slice %87 {offsets = [8, 0], sizes = [8, 16], strides = [1, 1]} : vector<16x16xf32> to vector<8x16xf32>
    %92 = arith.addf %90, %91 : vector<8x16xf32>
    %c0_36 = arith.constant 0 : index
    %c0_37 = arith.constant 0 : index
    %c0_38 = arith.constant 0 : index
    %c0_39 = arith.constant 0 : index
    %93 = vector.load %arg4[%c0_36, %c0_37, %c0_38, %c0_39] : memref<1x1x8x16xf32, #tpu.memory_space<vmem>>, vector<1x1x8x16xf32>
    %94 = vector.shape_cast %93 : vector<1x1x8x16xf32> to vector<8x16xf32>
    %95 = vector.shape_cast %92 : vector<8x16xf32> to vector<1x1x8x16xf32>
    tpu.vector_store %arg4[%c0_36, %c0_37, %c0_38, %c0_39], %95 {strides = array<i32>} : memref<1x1x8x16xf32, #tpu.memory_space<vmem>>, vector<1x1x8x16xf32>,
    return
  }
  func.func @transform_0(%arg0: i32, %arg1: i32) -> (i32, i32, i32, i32) {
    %c0_i32 = arith.constant 0 : i32
    %c0_i32_0 = arith.constant 0 : i32
    %c0_i32_1 = arith.constant 0 : i32
    return %arg0, %c0_i32, %arg1, %c0_i32_0 : i32, i32, i32, i32
  }
  func.func @transform_1(%arg0: i32, %arg1: i32) -> (i32, i32, i32, i32) {
    %c0_i32 = arith.constant 0 : i32
    %c0_i32_0 = arith.constant 0 : i32
    %c0_i32_1 = arith.constant 0 : i32
    return %arg0, %c0_i32, %arg1, %c0_i32_0 : i32, i32, i32, i32
  }
  func.func @transform_2(%arg0: i32, %arg1: i32) -> (i32, i32, i32, i32) {
    %c0_i32 = arith.constant 0 : i32
    %c0_i32_0 = arith.constant 0 : i32
    %c0_i32_1 = arith.constant 0 : i32
    return %arg0, %arg1, %c0_i32, %c0_i32_0 : i32, i32, i32, i32
  }
}

</mosaic_0001>

<bundles_post_ra>
// kernel: tpu_custom_call.1
= control target key start
LH: loop header
LB: loop body
LE: loop exit
PB: predicated region body
PF: predicated region fallthrough
CT: control target
= control target key end

     0   :  { %7 = vsyncpa [#allocation3], 0  ;;  %s1274_s0 = inlined_call_operand.hbm [shape: f32[2,4,16,16], index: 0, kind: input, shape index: {}]   ;;  %s1275_s1 = inlined_call_operand.hbm [shape: f32[2,4,16,16], index: 1, kind: input, shape index: {}]   ;;  %s1276_s2 = inlined_call_operand.hbm [shape: f32[2,1,8,16], index: 2, kind: output, shape index: {}]  }
   0x1   :  { %9 = vsyncpa [#allocation3 + $0x1], 0 }
   0x2   :  { %10 = vsyncpa [#allocation6], 0 }
   0x3   :  { %12 = vsyncpa [#allocation6 + $0x1], 0 }
   0x4   :  { %13 = vsyncpa [#allocation4], 0 }
   0x5   :  { %15 = vsyncpa [#allocation4 + $0x1], 0  ;;  %s902_s9 = smov 0   ;;  %s904_s10 = smov 0  }
   0x6   :  { %s906_s11 = smov 0   ;;  %s908_s12 = smov 0  }
   0x7   :  { %s910_s13 = smov 0   ;;  %s912_s14 = smov 0  }
   0x8 LB: > { %s631_s15 = sadd.s32 4294967295, %s877_s14   ;;  %s632_s16 = sadd.s32 4294967294, %s877_s14   ;;  %s877_s14 = sphi %s912_s14, %s21_s14   ;;  %s873_s13 = sphi %s910_s13, %s1294_s13   ;;  %s869_s12 = sphi %s908_s12, %s1293_s12   ;;  %s865_s11 = sphi %s906_s11, %s1292_s11   ;;  %s861_s10 = sphi %s904_s10, %s1291_s10   ;;  %s857_s9 = sphi %s902_s9, %s1290_s9  }
   0x9   : > { %s33_s17 = sadd.s32 1, %s873_s13  ;;  %s42_s18 = sadd.s32 1, %s865_s11 }
   0xa   : > { %p35_p0 = scmp.ge.s32.totalorder %s33_s17, 2  ;;  %p49_p1 = scmp.ne.s32.totalorder %s865_s11, %s861_s10 }
   0xb   : > { %p50_p2 = scmp.eq.s32.totalorder %s877_s14, 0  ;;  %p55_p3 = scmp.ne.s32.totalorder %s861_s10, %s857_s9 }
   0xc   : > { %s1296_s17 = smov (%p35_p0, %s33_s17), 0  ;;  %p56_p5 = scmp.eq.s32.totalorder %s631_s15, 0 }
   0xd   : > { %p943_p4 = por %p50_p2, %p49_p1  ;;  %s37_s20 = ssub.s32 %s873_s13, %s1296_s17 }
   0xe   : > { %p109_p6 = scmp.eq.s32.totalorder %s631_s15, 1  ;;  %p40_p7 = scmp.eq.s32.totalorder %s37_s20, 0 }
   0xf   : > { %p949_p8 = por %p56_p5, %p55_p3  ;;  %p115_p10 = scmp.eq.s32.totalorder %s632_s16, 1 }
  0x10   : > { %p953_p9 = por %p109_p6, %p49_p1  ;;  %p668_p13 = scmp.lt.s32.totalorder %s877_s14, 2 }
  0x11   : > { %s1280_s21 = scalar_select %p949_p8, 1, 0 }
  0x12   : > { %s1281_s22 = scalar_select %p953_p9, 1, 0 }
  0x13   : > { %s958_s23 = scalar_select %p40_p7, %s865_s11, %s42_s18  }
  0x14   : > { %p960_p11 = por %p115_p10, %p55_p3  ;;  %s967_s25 = sand.u32 1, %s865_s11  }
  0x15   : > { %s635_s26 = sshll.u32 %s967_s25, 6  ;;  %s649_s27 = sshll.u32 %s873_s13, 10 }
  0x16   : > { %s1282_s24 = scalar_select %p960_p11, 1, 0 }
  0x17   : > { %s976_s30 = scalar_lea.hbm %s1274_s0, %s649_s27  ;;  %s139_s3 = scalar_lea.vmem [#allocation2], %s635_s26 }
  0x18   : > { %s148_s4 = sshll.u32 %s139_s3, 4  ;;  %p984_p0 = pnand %p668_p13, %p943_p4  ;;  %s980_s4 = int_to_ptr.vmem [resolvable:$true] %s148_s4 }
  0x19   : > { %s136_s6 = scalar_lea.sflag [#allocation3], %s967_s25  ;;  %s731_s7 = scalar_lea.hbm %s976_s30, 1024 }
  0x1a   : > { %p732_p2 = scmp.ne.s32.totalorder %s976_s30, %s731_s7  ;;  %p733_p3 = pneg %p984_p0 }
  0x1b   : > { %s736_s16 = scalar_lea.hbm %s1274_s0, 2048  ;;  %p737_p4 = scmp.lt.u32.totalorder %s976_s30, %s1274_s0 }
  0x1c   : > { %p734_p5 = pnand %p733_p3, %p732_p2  ;;  %p738_p7 = scmp.lt.u32.totalorder %s736_s16, %s731_s7 }
  0x1d   : > { %p740_p13 = scmp.lt.u32.totalorder %s731_s7, %s976_s30 }
  0x1e   : > { %p735_p6 = pneg %p734_p5  ;;  %p739_p10 = por %p738_p7, %p737_p4 }
  0x20   : > { %p741_p12 = por %p740_p13, %p739_p10 }
  0x22   : > { %p742_p1 = pnand %p741_p12, %p735_p6 }
  0x24   : > { %745 = shalt.err (!%p742_p1)
}
  0x25   : > { %s746_s20 = scalar_lea.vmem %s980_s4, 1024  ;;  %s879_s28 = smov [#allocation2]  }
  0x26   : > { %p747_p2 = scmp.ne.s32.totalorder %s980_s4, %s746_s20  ;;  %s751_s29 = sshll.u32 %s879_s28, 4  ;;  %s752_s29 = int_to_ptr.vmem [resolvable:$false] %s751_s29 }
  0x27   : > { %s753_s3 = scalar_lea.vmem %s752_s29, 2048  ;;  %p754_p9 = scmp.lt.s32.totalorder %s980_s4, %s752_s29 }
  0x28   : > { %p749_p5 = pnand %p747_p2, %p733_p3  ;;  %p755_p4 = scmp.lt.s32.totalorder %s753_s3, %s746_s20 }
  0x2a   : > { %p750_p11 = pneg %p749_p5  ;;  %p756_p7 = por %p755_p4, %p754_p9 }
  0x2c   : > { %p757_p10 = pnand %p756_p7, %p750_p11 }
  0x2e   : > { %760 = shalt.err (!%p757_p10)
}
  0x2f   : > { %s880_s7 = smov 128   ;;  %s881_s8 = smov 8  }
  0x30   : > { %660 = dma.hbm_to_vmem [thread:$0]  (!%p984_p0), %s976_s30, 1024, %s980_s4, %s136_s6, %s880_s7, %s880_s7, %s881_s8  }
  0x31   : > { %p179_p9 = scmp.lt.s32.totalorder %s877_s14, 3  ;;  %s1026_s18 = scalar_lea.hbm %s1275_s1, %s649_s27 }
  0x32   : > { %p1284_p11 = scmp.ge.s32.totalorder %s877_s14, 1  ;;  %s162_s20 = scalar_lea.vmem [#allocation5], %s635_s26 }
  0x33   : > { %s171_s28 = sshll.u32 %s162_s20, 4  ;;  %s159_s30 = scalar_lea.sflag [#allocation6], %s967_s25  ;;  %s1036_s28 = int_to_ptr.vmem [resolvable:$true] %s171_s28 }
  0x34   : > { %p1030_p12 = pnand %p1284_p11, %p179_p9  ;;  %s761_s4 = scalar_lea.hbm %s1026_s18, 1024 }
  0x35   : > { %p762_p1 = scmp.ne.s32.totalorder %s1026_s18, %s761_s4  ;;  %s766_s29 = scalar_lea.hbm %s1275_s1, 2048 }
  0x36   : > { %p767_p2 = scmp.lt.u32.totalorder %s1026_s18, %s1275_s1  ;;  %p768_p5 = scmp.lt.u32.totalorder %s766_s29, %s761_s4 }
  0x37   : > { %p764_p6 = pnand %p762_p1, %p733_p3  ;;  %p770_p7 = scmp.lt.u32.totalorder %s761_s4, %s1026_s18 }
  0x38   : > { %p769_p4 = por %p768_p5, %p767_p2 }
  0x39   : > { %p765_p13 = pneg %p764_p6 }
  0x3a   : > { %p771_p10 = por %p770_p7, %p769_p4 }
  0x3c   : > { %p772_p9 = pnand %p771_p10, %p765_p13 }
  0x3e   : > { %775 = shalt.err (!%p772_p9)
}
  0x3f   : > { %s776_s26 = scalar_lea.vmem %s1036_s28, 1024  ;;  %s882_s16 = smov [#allocation5]  }
  0x40   : > { %p777_p11 = scmp.ne.s32.totalorder %s1036_s28, %s776_s26  ;;  %s781_s20 = sshll.u32 %s882_s16, 4  ;;  %s782_s20 = int_to_ptr.vmem [resolvable:$false] %s781_s20 }
  0x41   : > { %s783_s27 = scalar_lea.vmem %s782_s20, 2048  ;;  %p784_p8 = scmp.lt.s32.totalorder %s1036_s28, %s782_s20 }
  0x42   : > { %p779_p1 = pnand %p777_p11, %p733_p3  ;;  %p785_p2 = scmp.lt.s32.totalorder %s783_s27, %s776_s26 }
  0x44   : > { %p780_p6 = pneg %p779_p1  ;;  %p786_p5 = por %p785_p2, %p784_p8 }
  0x46   : > { %p787_p4 = pnand %p786_p5, %p780_p6 }
  0x48   : > { %790 = shalt.err (!%p787_p4)
}
  0x49   : > { %663 = dma.hbm_to_vmem [thread:$0]  (!%p984_p0), %s1026_s18, 1024, %s1036_s28, %s159_s30, %s880_s7, %s880_s7, %s881_s8  }
  0x4a   : > { %183 = sbr.rel (%p1030_p12) target bundleno = 521 (0x209), region = 28  ;;  %s1070_s4 = sand.u32 (!%p1030_p12), 1, %s861_s10  }
  0x4b   : > { %s642_s6 = sshll.u32 (!%p1030_p12), %s1070_s4, 6  ;;  %s186_s29 = scalar_lea.sflag (!%p1030_p12), [#allocation3], %s1070_s4 }
  0x4c   : > { %s189_s5 = scalar_lea.vmem (!%p1030_p12), [#allocation2], %s642_s6  ;;  %p1286_p8 = scmp.ne.s32.totalorder (!%p1030_p12), %s1280_s21, 0 }
  0x51   : > { %844 = dma.done.wait (%p1286_p8), %s186_s29, 1024  }
  0x52   : > { %846 = vsyncadd (%p1286_p8), %s186_s29, 4294966272  ;;  %s195_s25 = scalar_lea.sflag [#allocation6], %s1070_s4  ;;  %s1079_s7 = scalar_lea.vmem [#allocation5], %s642_s6 }
  0x53   : > { %848 = dma.done.wait (%p1286_p8), %s195_s25, 1024  }
  0x54   : > { %850 = vsyncadd (%p1286_p8), %s195_s25, 4294966272  ;;  %v226_v0 = vlaneseq  ;;  %vm245_vm0 = vcmask 130048   ;;  %v237_v2 = vld [vmem:[%s189_s5] sm:$0xff]  ;;  %v238_v3 = vld [vmem:[%s189_s5 + $0x8] sm:$0xff]  ;;  %s883_s21 = smov 16   ;;  %vm304_vm5 = vcmask 1047680  }
  0x55   : > { %v239_v4 = vld [vmem:[%s189_s5 + $0x10] sm:$0xff]  ;;  %v240_v5 = vld [vmem:[%s189_s5 + $0x18] sm:$0xff]  ;;  %v241_v6 = vld [vmem:[%s189_s5 + $0x20] sm:$0xff]  ;;  %v246_v8 = vsel %vm245_vm0, %v237_v2, 0.0  ;;  %v253_v10 = vsel %vm245_vm0, %v238_v3, 0.0  ;;  %s884_s8 = smov 113  }
  0x56   : > { %v1086_v1 = vshrl.u32 %v226_v0, 7  ;;  %v242_v7 = vld [vmem:[%s189_s5 + $0x28] sm:$0xff]  ;;  %v247_v9 = vsel %vm245_vm0, %v239_v4, 0.0  ;;  %v243_v11 = vld [vmem:[%s189_s5 + $0x30] sm:$0xff]  ;;  %v244_v12 = vld [vmem:[%s189_s5 + $0x38] sm:$0xff]  ;;  %v249_v14 = vsel %vm245_vm0, %v241_v6, 0.0 }
  0x57   : > { %v248_v13 = vadd.f32 %v247_v9, %v246_v8  ;;  %v254_v15 = vsel %vm245_vm0, %v240_v5, 0.0  ;;  %v256_v16 = vsel %vm245_vm0, %v242_v7, 0.0  ;;  %v260_v17 = vld [vmem:[%s1079_s7] sm:$0xff]  ;;  %v251_v18 = vsel %vm245_vm0, %v243_v11, 0.0  ;;  %v261_v21 = vld [vmem:[%s1079_s7 + $0x8] sm:$0xff]  ;;  %v262_v22 = vld [vmem:[%s1079_s7 + $0x10] sm:$0xff] }
  0x58   : > { %v255_v19 = vadd.f32 %v254_v15, %v253_v10  ;;  %v258_v20 = vsel %vm245_vm0, %v244_v12, 0.0  ;;  %v263_v23 = vld [vmem:[%s1079_s7 + $0x18] sm:$0xff]  ;;  %v268_v24 = vsel %vm245_vm0, %v260_v17, 0.0  ;;  %v264_v26 = vld [vmem:[%s1079_s7 + $0x20] sm:$0xff]  ;;  %v265_v27 = vld [vmem:[%s1079_s7 + $0x28] sm:$0xff]  ;;  %v269_v29 = vsel %vm245_vm0, %v262_v22, 0.0 }
  0x59   : > { %v250_v25 = vadd.f32 %v249_v14, %v248_v13  ;;  %v266_v28 = vld [vmem:[%s1079_s7 + $0x30] sm:$0xff]  ;;  %v275_v30 = vsel %vm245_vm0, %v261_v21, 0.0  ;;  %v276_v31 = vsel %vm245_vm0, %v263_v23, 0.0  ;;  %v267_v33 = vld [vmem:[%s1079_s7 + $0x38] sm:$0xff]  ;;  %v270_v34 = vadd.f32 %v269_v29, %v268_v24  ;;  %s885_s18 = smov 127   ;;  %s644_s19 = sshll.u32 %s1070_s4, 3 }
  0x5a   : > { %v257_v32 = vadd.f32 %v256_v16, %v255_v19  ;;  %v271_v35 = vsel %vm245_vm0, %v264_v26, 0.0  ;;  %v228_v36 = vadd.s32 8, %v1086_v1  ;;  %v273_v38 = vsel %vm245_vm0, %v266_v28, 0.0  ;;  %s646_s28 = sshll.u32 %s869_s12, 7  ;;  %s223_s30 = scalar_lea.vmem [#allocation7], %s644_s19 }
  0x5b   : > { %v252_v37 = vadd.f32 %v251_v18, %v250_v25  ;;  %v277_v39 = vadd.f32 %v276_v31, %v275_v30  ;;  %v278_v40 = vsel %vm245_vm0, %v265_v27, 0.0  ;;  %vm284_vm1 = vcmp.lt.s32.totalorder %v1086_v1, 1  ;;  %s523_s3 = sshll.u32 %s223_s30, 4  ;;  %s1224_s16 = scalar_lea.hbm %s1276_s2, %s646_s28  ;;  %s1226_s3 = int_to_ptr.vmem [resolvable:$true] %s523_s3 }
  0x5c   : > { %v259_v41 = vadd.f32 %v258_v20, %v257_v32  ;;  %v272_v42 = vadd.f32 %v271_v35, %v270_v34  ;;  %v280_v43 = vsel %vm245_vm0, %v267_v33, 0.0  ;;  %vm291_vm2 = vcmp.lt.s32.totalorder %v1086_v1, 7  ;;  %s509_s20 = scalar_lea.sflag [#allocation4], %s1070_s4  ;;  %s791_s27 = scalar_lea.vmem %s1226_s3, 128 }
  0x5d   : > { %v282_v44 = vrot.slane %v252_v37, 7  ;;  %v289_v45 = vrot.slane %v252_v37, 1  ;;  %v279_v46 = vadd.f32 %v278_v40, %v277_v39  ;;  %vm231_vm3 = vcmp.eq.s32.totalorder %v1086_v1, 0  ;;  %p792_p0 = scmp.ne.s32.totalorder %s1226_s3, %s791_s27  ;;  %p1287_p3 = scmp.ne.s32.totalorder %s1281_s22, 0 }
  0x5e   : > { %v283_v47 = vrot.slane %v259_v41, 7  ;;  %v290_v48 = vrot.slane %v259_v41, 1  ;;  %v274_v49 = vadd.f32 %v273_v38, %v272_v42  ;;  %vm234_vm4 = vcmp.eq.s32.totalorder %v228_v36, 15  ;;  %s886_s12 = smov [#allocation7]  }
  0x5f   : > { %v281_v50 = vadd.f32 %v280_v43, %v279_v46  ;;  %v296_v51 = vmul.f32 2.0, %v252_v37  ;;  %v297_v62 = vmul.f32 2.0, %v259_v41  ;;  %p793_p12 = pnand %p792_p0, %p1287_p3  ;;  %s795_s6 = sshll.u32 %s886_s12, 4  ;;  %s796_s6 = int_to_ptr.vmem [resolvable:$false] %s795_s6 }
  0x60   : > { %v286_v52 = vsel %vm284_vm1, %v283_v47, %v282_v44  ;;  %v292_v53 = vsel %vm291_vm2, %v289_v45, %v290_v48  ;;  %v393_v54 = vrot.slane %v274_v49, 7  ;;  %v399_v55 = vrot.slane %v274_v49, 1  ;;  %s797_s29 = scalar_lea.vmem %s796_s6, 256  ;;  %p798_p7 = scmp.lt.s32.totalorder %s1226_s3, %s796_s6 }
  0x61   : > { %v287_v56 = vsel %vm231_vm3, 0.0, %v286_v52  ;;  %v394_v57 = vrot.slane %v281_v50, 7  ;;  %v400_v58 = vrot.slane %v281_v50, 1  ;;  %v285_v59 = vsel %vm284_vm1, %v282_v44, %v283_v47  ;;  %p794_p13 = pneg %p793_p12  ;;  %p799_p10 = scmp.lt.s32.totalorder %s797_s29, %s791_s27 }
  0x62   : > { %v1124_v60 = vsub.f32 %v292_v53, %v287_v56  ;;  %v293_v61 = vsel %vm291_vm2, %v290_v48, %v289_v45  ;;  %v298_v4 = vadd.f32 %v296_v51, %v287_v56  ;;  %v405_v11 = vmul.f32 2.0, %v274_v49 }
  0x63   : > { %v396_v63 = vsel %vm284_vm1, %v394_v57, %v393_v54  ;;  %v401_v2 = vsel %vm291_vm2, %v399_v55, %v400_v58  ;;  %v295_v3 = vsel %vm234_vm4, 0.0, %v293_v61  ;;  %v395_v7 = vsel %vm284_vm1, %v393_v54, %v394_v57  ;;  %p800_p9 = por %p799_p10, %p798_p7 }
  0x64   : > { %337 = vrot.lane.b32.xlu0 %v1124_v60, %s883_s21  ;;  %v397_v5 = vsel %vm231_vm3, 0.0, %v396_v63  ;;  %v1137_v6 = vsub.f32 %v295_v3, %v285_v59  ;;  %v402_v8 = vsel %vm291_vm2, %v400_v58, %v399_v55  ;;  %v299_v13 = vadd.f32 %v297_v62, %v285_v59 }
  0x65   : > { %v1143_v9 = vsub.f32 %v401_v2, %v397_v5  ;;  %v404_v10 = vsel %vm234_vm4, 0.0, %v402_v8  ;;  %v406_v14 = vmul.f32 2.0, %v281_v50  ;;  %v300_v15 = vadd.f32 %v298_v4, %v292_v53  ;;  %p801_p11 = pnand %p800_p9, %p794_p13 }
  0x66   : > { %v1148_v12 = vsub.f32 %v404_v10, %v395_v7  ;;  %v407_v16 = vadd.f32 %v405_v11, %v397_v5  ;;  %v301_v1 = vadd.f32 %v299_v13, %v295_v3  ;;  %v230_v57 = vand.u32 127, %v226_v0 }
  0x67   : > { %445 = vrot.lane.b32.xlu1 %v1143_v9, %s883_s21  ;;  %v408_v17 = vadd.f32 %v406_v14, %v395_v7  ;;  %v367_v61 = vmul.f32 2.0, %v1124_v60  ;;  %v368_v5 = vmul.f32 2.0, %v1137_v6 }
  0x68   : > { %340 = vrot.lane.b32.xlu0 %v1137_v6, %s883_s21  ;;  %v409_v18 = vadd.f32 %v407_v16, %v401_v2  ;;  %vm235_vm6 = vcmp.gt.s32.totalorder %v230_v57, 0  ;;  %vm236_vm7 = vcmp.lt.s32.totalorder %v230_v57, 15 }
  0x69   : > { %v410_v19 = vadd.f32 %v408_v17, %v404_v10 }
  0x6b   : > { %448 = vrot.lane.b32.xlu1 %v1148_v12, %s883_s21 }
  0x6c   : > { %305 = vrot.lane.b32.xlu0 %v300_v15, %s883_s21 }
  0x6f   : > { %308 = vrot.lane.b32.xlu1 %v301_v1, %s883_s21 }
  0x70   : > { %413 = vrot.lane.b32.xlu0 %v409_v18, %s883_s21 }
  0x73   : > { %416 = vrot.lane.b32.xlu1 %v410_v19, %s883_s21 }
  0xd6   : > { %v338_v20 = vpop.permute.xlu0 %337 }
  0xd7   : > { %v339_v21 = vsel %vm304_vm5, %v338_v20, %v1124_v60 }
  0xd8   : > { %343 = vrot.lane.b32.xlu0 %v339_v21, %s883_s21 }
  0xd9   : > { %v446_v22 = vpop.permute.xlu1 %445 }
  0xda   : > { %v341_v23 = vpop.permute.xlu0 %340  ;;  %v447_v24 = vsel %vm304_vm5, %v446_v22, %v1143_v9 }
  0xdb   : > { %v342_v25 = vsel %vm304_vm5, %v341_v23, %v1137_v6 }
  0xdc   : > { %451 = vrot.lane.b32.xlu0 %v447_v24, %s883_s21  ;;  %345 = vrot.lane.b32.xlu1 %v342_v25, %s883_s21 }
  0xdd   : > { %v449_v26 = vpop.permute.xlu1 %448 }
  0xde   : > { %v450_v27 = vsel %vm304_vm5, %v449_v26, %v1148_v12  ;;  %v306_v28 = vpop.permute.xlu0 %305 }
  0xdf   : > { %v307_v29 = vsel %vm304_vm5, %v306_v28, %v300_v15  ;;  %v476_v28 = vmul.f32 2.0, %v1148_v12 }
  0xe0   : > { %453 = vrot.lane.b32.xlu1 %v450_v27, %s883_s21  ;;  %311 = vrot.lane.b32.xlu0 %v307_v29, %s883_s21 }
  0xe1   : > { %v309_v30 = vpop.permute.xlu1 %308 }
  0xe2   : > { %v310_v31 = vsel %vm304_vm5, %v309_v30, %v301_v1  ;;  %v414_v32 = vpop.permute.xlu0 %413 }
  0xe3   : > { %v415_v33 = vsel %vm304_vm5, %v414_v32, %v409_v18 }
  0xe4   : > { %313 = vrot.lane.b32.xlu1 %v310_v31, %s883_s21  ;;  %419 = vrot.lane.b32.xlu0 %v415_v33, %s883_s21 }
  0xe5   : > { %v417_v34 = vpop.permute.xlu1 %416 }
  0xe6   : > { %v418_v35 = vsel %vm304_vm5, %v417_v34, %v410_v19 }
  0xe8   : > { %421 = vrot.lane.b32.xlu1 %v418_v35, %s883_s21 }
 0x14a   : > { %v344_v36 = vpop.permute.xlu0 %343 }
 0x14b   : > { %v347_v37 = vsel %vm304_vm5, %v344_v36, %v1124_v60 }
 0x14c   : > { %359 = vrot.lane.b32.xlu0 %v347_v37, %s884_s8 }
 0x14e   : > { %v452_v38 = vpop.permute.xlu0 %451  ;;  %v346_v39 = vpop.permute.xlu1 %345 }
 0x14f   : > { %v455_v40 = vsel %vm304_vm5, %v452_v38, %v1143_v9  ;;  %v348_v41 = vsel %vm304_vm5, %v346_v39, %v1137_v6 }
 0x150   : > { %467 = vrot.lane.b32.xlu0 %v455_v40, %s884_s8  ;;  %361 = vrot.lane.b32.xlu1 %v348_v41, %s884_s8 }
 0x152   : > { %v454_v42 = vpop.permute.xlu1 %453  ;;  %v312_v43 = vpop.permute.xlu0 %311 }
 0x153   : > { %v456_v44 = vsel %vm304_vm5, %v454_v42, %v1148_v12  ;;  %v315_v45 = vsel %vm304_vm5, %v312_v43, %v300_v15 }
 0x154   : > { %351 = vrot.lane.b32.xlu0 %v347_v37, %s885_s18  ;;  %469 = vrot.lane.b32.xlu1 %v456_v44, %s884_s8 }
 0x156   : > { %v314_v46 = vpop.permute.xlu1 %313  ;;  %v420_v48 = vpop.permute.xlu0 %419 }
 0x157   : > { %v316_v47 = vsel %vm304_vm5, %v314_v46, %v301_v1  ;;  %v423_v49 = vsel %vm304_vm5, %v420_v48, %v409_v18  ;;  %v475_v18 = vmul.f32 2.0, %v1143_v9 }
 0x158   : > { %319 = vrot.lane.b32.xlu0 %v315_v45, %s885_s18  ;;  %353 = vrot.lane.b32.xlu1 %v348_v41, %s885_s18 }
 0x15a   : > { %v422_v50 = vpop.permute.xlu1 %421 }
 0x15b   : > { %v424_v51 = vsel %vm304_vm5, %v422_v50, %v410_v19 }
 0x15c   : > { %327 = vrot.lane.b32.xlu0 %v315_v45, %s884_s8  ;;  %321 = vrot.lane.b32.xlu1 %v316_v47, %s885_s18 }
 0x160   : > { %427 = vrot.lane.b32.xlu0 %v423_v49, %s885_s18  ;;  %329 = vrot.lane.b32.xlu1 %v316_v47, %s884_s8 }
 0x164   : > { %435 = vrot.lane.b32.xlu0 %v423_v49, %s884_s8  ;;  %429 = vrot.lane.b32.xlu1 %v424_v51, %s885_s18 }
 0x168   : > { %459 = vrot.lane.b32.xlu0 %v455_v40, %s885_s18  ;;  %437 = vrot.lane.b32.xlu1 %v424_v51, %s884_s8 }
 0x16c   : > { %461 = vrot.lane.b32.xlu1 %v456_v44, %s885_s18 }
 0x1be   : > { %v360_v52 = vpop.permute.xlu0 %359 }
 0x1bf   : > { %v365_v2 = vsel %vm235_vm6, %v360_v52, 0.0 }
 0x1c0   : > { %v369_v8 = vadd.f32 %v367_v61, %v365_v2 }
 0x1c2   : > { %v468_v53 = vpop.permute.xlu0 %467  ;;  %v362_v54 = vpop.permute.xlu1 %361 }
 0x1c3   : > { %v366_v7 = vsel %vm235_vm6, %v362_v54, 0.0  ;;  %v473_v6 = vsel %vm235_vm6, %v468_v53, 0.0 }
 0x1c4   : > { %v370_v16 = vadd.f32 %v368_v5, %v366_v7  ;;  %v477_v27 = vadd.f32 %v475_v18, %v473_v6 }
 0x1c6   : > { %v352_v55 = vpop.permute.xlu0 %351  ;;  %v470_v56 = vpop.permute.xlu1 %469 }
 0x1c7   : > { %v357_v0 = vsel %vm236_vm7, %v352_v55, 0.0  ;;  %v474_v29 = vsel %vm235_vm6, %v470_v56, 0.0 }
 0x1c8   : > { %v371_v1 = vadd.f32 %v369_v8, %v357_v0  ;;  %v478_v38 = vadd.f32 %v476_v28, %v474_v29 }
 0x1ca   : > { %v320_v58 = vpop.permute.xlu0 %319  ;;  %v354_v59 = vpop.permute.xlu1 %353  ;;  %v375_v25 = vmul.f32 %v371_v1, %v371_v1 }
 0x1cb   : > { %v325_v3 = vsel %vm236_vm7, %v320_v58, 0.0  ;;  %v358_v60 = vsel %vm236_vm7, %v354_v59, 0.0 }
 0x1cc   : > { %v372_v19 = vadd.f32 %v370_v16, %v358_v60 }
 0x1ce   : > { %v328_v62 = vpop.permute.xlu0 %327  ;;  %v322_v63 = vpop.permute.xlu1 %321  ;;  %v376_v30 = vmul.f32 %v372_v19, %v372_v19 }
 0x1cf   : > { %v333_v4 = vsel %vm235_vm6, %v328_v62, 0.0  ;;  %v326_v14 = vsel %vm236_vm7, %v322_v63, 0.0 }
 0x1d0   : > { %v335_v10 = vsub.f32 %v325_v3, %v333_v4 }
 0x1d2   : > { %v428_v11 = vpop.permute.xlu0 %427  ;;  %v330_v13 = vpop.permute.xlu1 %329  ;;  %v373_v20 = vmul.f32 %v335_v10, %v335_v10 }
 0x1d3   : > { %v334_v15 = vsel %vm235_vm6, %v330_v13, 0.0  ;;  %v433_v23 = vsel %vm236_vm7, %v428_v11, 0.0 }
 0x1d4   : > { %v336_v17 = vsub.f32 %v326_v14, %v334_v15  ;;  %v377_v31 = vadd.f32 %v375_v25, %v373_v20 }
 0x1d6   : > { %v436_v21 = vpop.permute.xlu0 %435  ;;  %v430_v22 = vpop.permute.xlu1 %429  ;;  %v374_v26 = vmul.f32 %v336_v17, %v336_v17  ;;  %723 = vrsqrt.f32 %v377_v31  ;;  %vm381_vm8 = vcmp.eq.f32.partialorder %v377_v31, inf  ;;  %v384_v59 = vand.u32 2147483648, %v377_v31 }
 0x1d7   : > { %v441_v24 = vsel %vm235_vm6, %v436_v21, 0.0  ;;  %v434_v39 = vsel %vm236_vm7, %v430_v22, 0.0  ;;  %vm383_vm12 = vcmp.eq.f32.partialorder %v377_v31, 0.0 }
 0x1d8   : > { %v443_v9 = vsub.f32 %v433_v23, %v441_v24  ;;  %v378_v36 = vadd.f32 %v376_v30, %v374_v26 }
 0x1da   : > { %v460_v32 = vpop.permute.xlu0 %459  ;;  %v438_v33 = vpop.permute.xlu1 %437  ;;  %v481_v40 = vmul.f32 %v443_v9, %v443_v9  ;;  %725 = vrsqrt.f32 %v378_v36  ;;  %vm388_vm11 = vcmp.eq.f32.partialorder %v378_v36, inf  ;;  %v391_v3 = vand.u32 2147483648, %v378_v36 }
 0x1db   : > { %v465_v34 = vsel %vm236_vm7, %v460_v32, 0.0  ;;  %v442_v35 = vsel %vm235_vm6, %v438_v33, 0.0  ;;  %vm390_vm14 = vcmp.eq.f32.partialorder %v378_v36, 0.0 }
 0x1dc   : > { %v479_v37 = vadd.f32 %v477_v27, %v465_v34  ;;  %v444_v12 = vsub.f32 %v434_v39, %v442_v35 }
 0x1de   : > { %v483_v41 = vmul.f32 %v479_v37, %v479_v37  ;;  %v462_v42 = vpop.permute.xlu1 %461  ;;  %v482_v46 = vmul.f32 %v444_v12, %v444_v12 }
 0x1df   : > { %v466_v43 = vsel %vm236_vm7, %v462_v42, 0.0 }
 0x1e0   : > { %v485_v44 = vadd.f32 %v483_v41, %v481_v40  ;;  %v480_v45 = vadd.f32 %v478_v38, %v466_v43  ;;  %v724_v49 = vpop.eup %723 }
 0x1e1   : > { %v380_v51 = vmul.f32 %v724_v49, %v377_v31 }
 0x1e2   : > { %727 = vrsqrt.f32 %v485_v44  ;;  %v484_v47 = vmul.f32 %v480_v45, %v480_v45  ;;  %vm489_vm9 = vcmp.eq.f32.partialorder %v485_v44, inf  ;;  %v492_v55 = vand.u32 2147483648, %v485_v44 }
 0x1e3   : > { %v382_v56 = vsel %vm381_vm8, %v377_v31, %v380_v51  ;;  %vm491_vm10 = vcmp.eq.f32.partialorder %v485_v44, 0.0 }
 0x1e4   : > { %v486_v48 = vadd.f32 %v484_v47, %v482_v46  ;;  %v726_v50 = vpop.eup %725  ;;  %v385_v2 = vsel %vm383_vm12, %v384_v59, %v382_v56 }
 0x1e5   : > { %v387_v53 = vmul.f32 %v726_v50, %v378_v36 }
 0x1e6   : > { %729 = vrsqrt.f32 %v486_v48  ;;  %vm496_vm13 = vcmp.eq.f32.partialorder %v486_v48, inf  ;;  %v499_v4 = vand.u32 2147483648, %v486_v48  ;;  %vm498_vm15 = vcmp.eq.f32.partialorder %v486_v48, 0.0 }
 0x1e7   : > { %v389_v63 = vsel %vm388_vm11, %v378_v36, %v387_v53 }
 0x1e8   : > { %v392_v0 = vsel %vm390_vm14, %v391_v3, %v389_v63 }
 0x1ec   : > { %v728_v52 = vpop.eup %727 }
 0x1ed   : > { %v488_v54 = vmul.f32 %v728_v52, %v485_v44 }
 0x1ef   : > { %v490_v57 = vsel %vm489_vm9, %v485_v44, %v488_v54 }
 0x1f0   : > { %v730_v58 = vpop.eup %729  ;;  %v493_v61 = vsel %vm491_vm10, %v492_v55, %v490_v57 }
 0x1f1   : > { %v495_v62 = vmul.f32 %v730_v58, %v486_v48  ;;  %v501_v7 = vsub.f32 %v385_v2, %v493_v61 }
 0x1f3   : > { %v497_v5 = vsel %vm496_vm13, %v486_v48, %v495_v62  ;;  %v503_v11 = vmul.f32 %v501_v7, %v501_v7 }
 0x1f4   : > { %v500_v8 = vsel %vm498_vm15, %v499_v4, %v497_v5 }
 0x1f5   : > { %v502_v10 = vsub.f32 %v392_v0, %v500_v8 }
 0x1f7   : > { %v504_v13 = vmul.f32 %v502_v10, %v502_v10 }
 0x1f9   : > { %v506_v60 = vadd.f32 %v504_v13, %v503_v11 }
 0x1fb   : > { %507 = vst.msk [vmem:[%s223_s30] sm:$0xff] %vm245_vm0, %v506_v60 }
 0x1fc   : > { %804 = shalt.err (!%p801_p11)
}
 0x1fd   : > { %s805_s4 = scalar_lea.hbm %s1224_s16, 128  ;;  %s809_s7 = scalar_lea.hbm %s1276_s2, 256 }
 0x1fe   : > { %p806_p1 = scmp.ne.s32.totalorder %s1224_s16, %s805_s4  ;;  %p810_p5 = scmp.lt.u32.totalorder %s1224_s16, %s1276_s2 }
 0x1ff   : > { %p811_p4 = scmp.lt.u32.totalorder %s809_s7, %s805_s4  ;;  %p813_p0 = scmp.lt.u32.totalorder %s805_s4, %s1224_s16 }
 0x200   : > { %p807_p6 = pnand %p806_p1, %p1287_p3 }
 0x201   : > { %p812_p8 = por %p811_p4, %p810_p5 }
 0x202   : > { %p808_p2 = pneg %p807_p6 }
 0x203   : > { %p814_p12 = por %p813_p0, %p812_p8 }
 0x205   : > { %p815_p13 = pnand %p814_p12, %p808_p2 }
 0x207   : > { %818 = shalt.err (!%p815_p13)
}
 0x208   : > { %655 = dma.vmem_to_hbm [thread:$0]  (%p1287_p3), %s1226_s3, 128, %s1224_s16, %s509_s20  }
 0x209 PF: > { %s535_s18 = sand.u32 1, %s857_s9   ;;  %p1288_p7 = scmp.ne.s32.totalorder %s1282_s24, 0 }
 0x20a   : > { %p1289_p10 = scmp.ge.s32.totalorder %s877_s14, 2  ;;  %s536_s19 = scalar_lea.sflag [#allocation4], %s535_s18 }
 0x20c   : > { %p665_p9 = pnand %p1289_p10, %p1288_p7 }
 0x20e   : > { %852 = dma.done.wait (!%p665_p9), %s536_s19, 128  }
 0x20f   : > { %854 = vsyncadd (!%p665_p9), %s536_s19, 4294967168  ;;  %s21_s14 = sadd.s32 1, %s877_s14   ;;  %s1290_s9 = smov %s861_s10 }
 0x210   : > { %p18_p11 = scmp.ge.s32.totalorder %s21_s14, 4   ;;  %s1291_s10 = smov %s865_s11 }
 0x211   : > { %s1292_s11 = smov %s958_s23  ;;  %s1293_s12 = smov %s873_s13 }
 0x212   : > { %s1294_s13 = smov %s1296_s17  ;;  %20 = sbr.rel (!%p18_p11) target bundleno = 8 (0x8), region = 86 }
 0x219   :  { %541 = vsyncpa [#allocation3], 1 }
 0x21a   :  { %543 = vsyncpa [#allocation3 + $0x1], 1 }
 0x21b   :  { %544 = vsyncpa [#allocation6], 1 }
 0x21c   :  { %546 = vsyncpa [#allocation6 + $0x1], 1 }
 0x21d   :  { %547 = vsyncpa [#allocation4], 1 }
 0x21e   :  { %549 = vsyncpa [#allocation4 + $0x1], 1 }

</bundles_post_ra>
